<compile_context>
chip_gen: v7x
topology: tpu7x:2x2x1
jax: 0.10.0
libtpu: 0.0.40
codegen_flags: <defaults>
</compile_context>

<pallas_src>
import math
import jax
import jax.numpy as jnp
from jax.experimental import pallas as pl

# ----------------------------- config ---------------------------------------
NUM_HIDDEN = 32          # C
NUM_IN = 64              # Cin
NUM_HEADS = 4            # H
BATCH = 2                # B
NODES = 8                # N
TOP_K = 4                # K
LN_EPS = 1e-5
NEG_INF = float(jnp.finfo(jnp.float32).min)


# ----------------------------- kernel ---------------------------------------
def _layer_norm(x, g, b):
    mu = jnp.mean(x, axis=-1, keepdims=True)
    var = jnp.mean(jnp.square(x - mu), axis=-1, keepdims=True)
    return (x - mu) * jax.lax.rsqrt(var + LN_EPS) * g + b


def decoder_layer_kernel(hV_ref, lhs_ref, masks_ref, wslab_ref, vecs_ref, out_ref):
    M, C = hV_ref.shape                   # M = B*N
    P = lhs_ref.shape[1]                  # padded input width = max(Cin, C)
    KM = lhs_ref.shape[0] - M             # K * M
    K = KM // M
    H = NUM_HEADS
    C4 = 4 * C

    hV = hV_ref[...]                      # (M, C)       f32 (residual path)
    masks = masks_ref[...]                # (KM + M, 1)  f32
    mA = masks[0:KM, :]                   # (KM, 1) neighbor-major attend mask
    mV = masks[KM:KM + M, :]              # (M, 1)  node mask

    vecs = vecs_ref[...]                  # (8, C4) f32 packed vectors
    g1, b1 = vecs[0:1, 0:C], vecs[1:2, 0:C]
    g2, b2 = vecs[2:3, 0:C], vecs[3:4, 0:C]
    b_out = vecs[4:5, 0:C]
    b_in = vecs[5:6, 0:C4]

    # static slices of the packed bf16 weight slab (row offsets are 16-aligned
    # for this config: P=64, C=32, C4=128)
    r_o = P
    r_in = r_o + C
    r_out = r_in + C
    r_s = r_out + C4
    r_st = r_s + C
    w_kvq = wslab_ref[0:P, 0:3 * C]       # [W_K | W_V | W_Q/sqrt(d) padded]
    w_o = wslab_ref[r_o:r_in, 0:C]
    w_in = wslab_ref[r_in:r_out, 0:C4]
    w_out = wslab_ref[r_out:r_s, 0:C]
    sel = wslab_ref[r_s:r_st, 0:H]        # (C, H) head selector (0/1, bf16)
    sel_t = wslab_ref[r_st:r_st + H, 0:C]  # (H, C)

    # ---- NeighborAttention --------------------------------------------------
    # single fused projection on the MXU: [h_E ; h_V_pad] @ [W_K | W_V | W_Q*s]
    kvq = jnp.dot(lhs_ref[...], w_kvq,
                  preferred_element_type=jnp.float32)        # (KM+M, 3C) f32
    Ke = kvq[0:KM, 0:C]                                      # (KM, C)
    Ve = kvq[0:KM, C:2 * C]                                  # (KM, C)
    Q = kvq[KM:KM + M, 2 * C:3 * C]                          # (M, C), pre-scaled

    # replicate Q across the K neighbor blocks (sublane vreg copies, no XLU)
    q_rep = jnp.concatenate([Q] * K, axis=0)                 # (KM, C)

    # all logits in ONE bf16 MXU pass: per-head d-contraction via selector
    logits = jnp.dot((q_rep * Ke).astype(jnp.bfloat16), sel,
                     preferred_element_type=jnp.float32)     # (KM, H)
    logits = jnp.where(mA > 0, logits, NEG_INF)

    # numerically stable masked softmax over the K neighbor blocks
    mmax = logits[0:M, :]
    for k in range(1, K):
        mmax = jnp.maximum(mmax, logits[k * M:(k + 1) * M, :])
    e = jnp.exp(logits - jnp.concatenate([mmax] * K, axis=0))  # (KM, H)
    ssum = e[0:M, :]
    for k in range(1, K):
        ssum = ssum + e[k * M:(k + 1) * M, :]
    inv_s = pl.reciprocal(ssum, approx=True)                  # (M, H)
    attend = e * jnp.concatenate([inv_s] * K, axis=0) * mA    # (KM, H)

    # broadcast each head weight across its d channels in ONE bf16 MXU pass
    w = jnp.dot(attend.astype(jnp.bfloat16), sel_t,
                preferred_element_type=jnp.float32)           # (KM, C)
    wv = w * Ve                                               # (KM, C)
    upd = wv[0:M, :]
    for k in range(1, K):
        upd = upd + wv[k * M:(k + 1) * M, :]                  # (M, C)

    dh = jnp.dot(upd.astype(jnp.bfloat16), w_o,
                 preferred_element_type=jnp.float32)          # (M, C)

    # ---- residual + LayerNorm 0 (dropout = identity in eval) ----------------
    h1 = _layer_norm(hV + dh, g1, b1)

    # ---- PositionWiseFeedForward (exact / erf GELU, like F.gelu default) ----
    hidden = jnp.dot(h1.astype(jnp.bfloat16), w_in,
                     preferred_element_type=jnp.float32) + b_in
    hidden = 0.5 * hidden * (1.0 + jax.lax.erf(hidden * (1.0 / math.sqrt(2.0))))
    ff = jnp.dot(hidden.astype(jnp.bfloat16), w_out,
                 preferred_element_type=jnp.float32) + b_out

    # ---- residual + LayerNorm 1 + node mask ----------------------------------
    h2 = _layer_norm(h1 + ff, g2, b2)
    out_ref[...] = mV * h2


# ----------------------------- one-time parameter packing --------------------
def pack_decoder_params(params, num_heads=NUM_HEADS):
    """Pack all weights into one bf16 slab + one f32 vector slab. Call ONCE."""
    W_Q, W_K, W_V, W_O = params["W_Q"], params["W_K"], params["W_V"], params["W_O"]
    W_in, W_out = params["W_in"], params["W_out"]
    C = W_Q.shape[0]
    Cin = W_K.shape[0]
    C4 = W_in.shape[1]
    H = num_heads
    d = C // H
    P = max(Cin, C)

    def pad_to(x, rows, cols):
        return jnp.pad(x, ((0, rows - x.shape[0]), (0, cols - x.shape[1])))

    # fused projection weight: [W_K | W_V | W_Q / sqrt(d)] with zero-row padding
    w_kvq = jnp.concatenate([pad_to(W_K, P, C), pad_to(W_V, P, C),
                             pad_to(W_Q / math.sqrt(d), P, C)], axis=1)   # (P, 3C)

    # block-diagonal head selector (exact 0/1 values -> exact in bf16)
    c_idx = jax.lax.broadcasted_iota(jnp.int32, (C, H), 0)
    h_idx = jax.lax.broadcasted_iota(jnp.int32, (C, H), 1)
    sel = (c_idx // d == h_idx).astype(jnp.float32)                       # (C, H)
    sel_t = sel.T                                                         # (H, C)

    lanes = max(128, C4, 3 * C)
    slab = jnp.concatenate([
        pad_to(w_kvq, P, lanes),
        pad_to(W_O, C, lanes),
        pad_to(W_in, C, lanes),
        pad_to(W_out, C4, lanes),
        pad_to(sel, C, lanes),
        pad_to(sel_t, H, lanes),
    ], axis=0)
    pad_rows = (-slab.shape[0]) % 16                    # bf16 sublane packing
    if pad_rows:
        slab = jnp.pad(slab, ((0, pad_rows), (0, 0)))
    slab = slab.astype(jnp.bfloat16)

    vecs = jnp.concatenate([
        pad_to(params["g1"], 1, C4), pad_to(params["b1"], 1, C4),
        pad_to(params["g2"], 1, C4), pad_to(params["b2"], 1, C4),
        pad_to(params["b_out"], 1, C4), pad_to(params["b_in"], 1, C4),
        jnp.zeros((2, C4), jnp.float32),
    ], axis=0)                                          # (8, C4) f32

    return {"w_slab": slab, "vecs": vecs}


# ----------------------------- per-call wrapper -------------------------------
@jax.jit
def decoder_layer(h_V, h_E, mask_V, mask_attend, packed):
    B, N, C = h_V.shape
    K, Cin = h_E.shape[2], h_E.shape[3]
    M = B * N
    P = max(Cin, C)

    hV_f = h_V.reshape(M, C)
    # neighbor-major flatten: per-neighbor K/V rows are contiguous sublane blocks
    # TODO(synk): at large M, fold this transpose into the kernel DMA (index_map).
    hE_f = jnp.transpose(h_E, (2, 0, 1, 3)).reshape(K * M, Cin)
    if Cin < P:
        hE_f = jnp.pad(hE_f, ((0, 0), (0, P - Cin)))
    hV_pad = hV_f if C == P else jnp.pad(hV_f, ((0, 0), (0, P - C)))
    lhs = jnp.concatenate([hE_f, hV_pad], axis=0).astype(jnp.bfloat16)   # (KM+M, P)

    # masks packed neighbor-major + node mask appended -> one input
    mA_f = jnp.transpose(mask_attend, (2, 0, 1)).reshape(K * M, 1)
    masks = jnp.concatenate([mA_f, mask_V.reshape(M, 1)], axis=0)        # (KM+M, 1)

    out_flat = pl.pallas_call(
        decoder_layer_kernel,
        out_shape=jax.ShapeDtypeStruct((M, C), jnp.float32),
    )(hV_f, lhs, masks, packed["w_slab"], packed["vecs"])

    return out_flat.reshape(B, N, C)


# ----------------------------- reference (plain JAX, f32) --------------------
def decoder_layer_ref(h_V, h_E, mask_V, mask_attend, p):
    B, N, C = h_V.shape
    K = h_E.shape[2]
    H, d = NUM_HEADS, C // NUM_HEADS

    Q = h_V @ p["W_Q"]                                   # (B, N, C)
    Ke = h_E @ p["W_K"]                                  # (B, N, K, C)
    Ve = h_E @ p["W_V"]                                  # (B, N, K, C)

    Qr = Q.reshape(B, N, 1, H, d)
    Kr = Ke.reshape(B, N, K, H, d)
    Vr = Ve.reshape(B, N, K, H, d)

    logits = jnp.sum(Qr * Kr, axis=-1) / math.sqrt(d)    # (B, N, K, H)
    mA = mask_attend[..., None]                          # (B, N, K, 1)
    logits = jnp.where(mA > 0, logits, NEG_INF)
    attend = jax.nn.softmax(logits, axis=2) * mA
    upd = jnp.sum(attend[..., None] * Vr, axis=2).reshape(B, N, C)
    dh = upd @ p["W_O"]

    def ln(x, g, b):
        mu = jnp.mean(x, -1, keepdims=True)
        var = jnp.mean((x - mu) ** 2, -1, keepdims=True)
        return (x - mu) / jnp.sqrt(var + LN_EPS) * g + b

    h1 = ln(h_V + dh, p["g1"], p["b1"])
    hid = h1 @ p["W_in"] + p["b_in"]
    hid = 0.5 * hid * (1.0 + jax.lax.erf(hid / math.sqrt(2.0)))
    ff = hid @ p["W_out"] + p["b_out"]
    h2 = ln(h1 + ff, p["g2"], p["b2"])
    return mask_V * h2


# ----------------------------- main ------------------------------------------
if __name__ == "__main__":
    C, Cin, B, N, K = NUM_HIDDEN, NUM_IN, BATCH, NODES, TOP_K
    key = jax.random.PRNGKey(0)
    ks = jax.random.split(key, 16)

    def init(k, shape, fan_in):
        return (jax.random.normal(k, shape, jnp.float32) / math.sqrt(fan_in))

    params = {
        "W_Q": init(ks[0], (C, C), C),
        "W_K": init(ks[1], (Cin, C), Cin),
        "W_V": init(ks[2], (Cin, C), Cin),
        "W_O": init(ks[3], (C, C), C),
        "g1": jnp.ones((1, C), jnp.float32) + 0.1 * jax.random.normal(ks[4], (1, C)),
        "b1": 0.1 * jax.random.normal(ks[5], (1, C), jnp.float32),
        "W_in": init(ks[6], (C, 4 * C), C),
        "b_in": 0.1 * jax.random.normal(ks[7], (1, 4 * C), jnp.float32),
        "W_out": init(ks[8], (4 * C, C), 4 * C),
        "b_out": 0.1 * jax.random.normal(ks[9], (1, C), jnp.float32),
        "g2": jnp.ones((1, C), jnp.float32) + 0.1 * jax.random.normal(ks[10], (1, C)),
        "b2": 0.1 * jax.random.normal(ks[11], (1, C), jnp.float32),
    }

    h_V = jax.random.normal(ks[12], (B, N, C), jnp.float32)
    h_E = jax.random.normal(ks[13], (B, N, K, Cin), jnp.float32)
    mask_attend = (jax.random.uniform(ks[14], (B, N, K)) > 0.3).astype(jnp.float32)
    mask_V = (jax.random.uniform(ks[15], (B, N, 1)) > 0.2).astype(jnp.float32)

    # one-time packing (hoisted out of the per-call path)
    packed = jax.tree_util.tree_map(jax.block_until_ready,
                                    pack_decoder_params(params))

    out = decoder_layer(h_V, h_E, mask_V, mask_attend, packed)
    out = jax.block_until_ready(out)

    ref = decoder_layer_ref(h_V, h_E, mask_V, mask_attend, params)
    ref = jax.block_until_ready(ref)

    assert out.shape == (B, N, C)
    assert bool(jnp.all(jnp.isfinite(out)))
    # bf16 matmul operands with f32 accumulation vs. a pure-f32 reference
    assert bool(jnp.allclose(out, ref, rtol=5e-2, atol=5e-2)), "mismatch vs reference"

    print("KERNEL_OK")
</pallas_src>

<mosaic_0001>
module attributes {stable_mosaic.version = 11 : i64} {
  func.func @decoder_layer_kernel(%arg0: memref<16x32xf32, #tpu.memory_space<vmem>>, %arg1: memref<80x64xbf16, #tpu.memory_space<vmem>>, %arg2: memref<80x1xf32, #tpu.memory_space<vmem>>, %arg3: memref<304x128xbf16, #tpu.memory_space<vmem>>, %arg4: memref<8x128xf32, #tpu.memory_space<vmem>>, %arg5: memref<16x32xf32, #tpu.memory_space<vmem>>) attributes {dimension_semantics = [], scalar_prefetch = 0 : i64, scratch_operands = 0 : i64, tpu.core_type = #tpu.core_type<tc>} {
    %c0 = arith.constant 0 : index
    %c0_0 = arith.constant 0 : index
    %0 = vector.load %arg0[%c0, %c0_0] : memref<16x32xf32, #tpu.memory_space<vmem>>, vector<16x32xf32>
    %c0_1 = arith.constant 0 : index
    %c0_2 = arith.constant 0 : index
    %1 = vector.load %arg2[%c0_1, %c0_2] : memref<80x1xf32, #tpu.memory_space<vmem>>, vector<80x1xf32>
    %2 = vector.extract_strided_slice %1 {offsets = [0, 0], sizes = [64, 1], strides = [1, 1]} : vector<80x1xf32> to vector<64x1xf32>
    %3 = vector.extract_strided_slice %1 {offsets = [64, 0], sizes = [16, 1], strides = [1, 1]} : vector<80x1xf32> to vector<16x1xf32>
    %c0_3 = arith.constant 0 : index
    %c0_4 = arith.constant 0 : index
    %4 = vector.load %arg4[%c0_3, %c0_4] : memref<8x128xf32, #tpu.memory_space<vmem>>, vector<8x128xf32>
    %5 = vector.extract_strided_slice %4 {offsets = [0, 0], sizes = [1, 32], strides = [1, 1]} : vector<8x128xf32> to vector<1x32xf32>
    %6 = vector.extract_strided_slice %4 {offsets = [1, 0], sizes = [1, 32], strides = [1, 1]} : vector<8x128xf32> to vector<1x32xf32>
    %7 = vector.extract_strided_slice %4 {offsets = [2, 0], sizes = [1, 32], strides = [1, 1]} : vector<8x128xf32> to vector<1x32xf32>
    %8 = vector.extract_strided_slice %4 {offsets = [3, 0], sizes = [1, 32], strides = [1, 1]} : vector<8x128xf32> to vector<1x32xf32>
    %9 = vector.extract_strided_slice %4 {offsets = [4, 0], sizes = [1, 32], strides = [1, 1]} : vector<8x128xf32> to vector<1x32xf32>
    %10 = vector.extract_strided_slice %4 {offsets = [5, 0], sizes = [1, 128], strides = [1, 1]} : vector<8x128xf32> to vector<1x128xf32>
    %c0_5 = arith.constant 0 : index
    %c0_6 = arith.constant 0 : index
    %11 = vector.load %arg3[%c0_5, %c0_6] : memref<304x128xbf16, #tpu.memory_space<vmem>>, vector<64x96xbf16>
    %c64 = arith.constant 64 : index
    %c0_7 = arith.constant 0 : index
    %12 = vector.load %arg3[%c64, %c0_7] : memref<304x128xbf16, #tpu.memory_space<vmem>>, vector<32x32xbf16>
    %c96 = arith.constant 96 : index
    %c0_8 = arith.constant 0 : index
    %13 = vector.load %arg3[%c96, %c0_8] : memref<304x128xbf16, #tpu.memory_space<vmem>>, vector<32x128xbf16>
    %c128 = arith.constant 128 : index
    %c0_9 = arith.constant 0 : index
    %14 = vector.load %arg3[%c128, %c0_9] : memref<304x128xbf16, #tpu.memory_space<vmem>>, vector<128x32xbf16>
    %c256 = arith.constant 256 : index
    %c0_10 = arith.constant 0 : index
    %15 = vector.load %arg3[%c256, %c0_10] : memref<304x128xbf16, #tpu.memory_space<vmem>>, vector<32x4xbf16>
    %c288 = arith.constant 288 : index
    %c0_11 = arith.constant 0 : index
    %16 = vector.load %arg3[%c288, %c0_11] : memref<304x128xbf16, #tpu.memory_space<vmem>>, vector<4x32xbf16>
    %c0_12 = arith.constant 0 : index
    %c0_13 = arith.constant 0 : index
    %17 = vector.load %arg1[%c0_12, %c0_13] : memref<80x64xbf16, #tpu.memory_space<vmem>>, vector<80x64xbf16>
    %cst = arith.constant dense<0.000000e+00> : vector<80x96xf32>
    %18 = tpu.matmul %17, %11, %cst {dimension_numbers = #tpu.dot_dimension_numbers<[1], [0], [0], [1], [0, 0, 1, 1], [], []>} : vector<80x64xbf16>, vector<64x96xbf16>, vector<80x96xf32> -> vector<80x96xf32>
    %19 = vector.extract_strided_slice %18 {offsets = [0, 0], sizes = [64, 32], strides = [1, 1]} : vector<80x96xf32> to vector<64x32xf32>
    %20 = vector.extract_strided_slice %18 {offsets = [0, 32], sizes = [64, 32], strides = [1, 1]} : vector<80x96xf32> to vector<64x32xf32>
    %21 = vector.extract_strided_slice %18 {offsets = [64, 64], sizes = [16, 32], strides = [1, 1]} : vector<80x96xf32> to vector<16x32xf32>
    %22 = tpu.concatenate %21, %21, %21, %21 in 0 : vector<16x32xf32>, vector<16x32xf32>, vector<16x32xf32>, vector<16x32xf32> -> vector<64x32xf32>
    %23 = arith.mulf %22, %19 : vector<64x32xf32>
    %24 = arith.truncf %23 : vector<64x32xf32> to vector<64x32xbf16>
    %cst_14 = arith.constant dense<0.000000e+00> : vector<64x4xf32>
    %25 = tpu.matmul %24, %15, %cst_14 {dimension_numbers = #tpu.dot_dimension_numbers<[1], [0], [0], [1], [0, 0, 1, 1], [], []>} : vector<64x32xbf16>, vector<32x4xbf16>, vector<64x4xf32> -> vector<64x4xf32>
    %cst_15 = arith.constant 0.000000e+00 : f32
    %26 = vector.broadcast %cst_15 : f32 to vector<64x1xf32>
    %27 = arith.cmpf ogt, %2, %26 : vector<64x1xf32>
    %cst_16 = arith.constant -3.40282347E+38 : f32
    %28 = vector.shape_cast %27 : vector<64x1xi1> to vector<64x1xi1>
    %29 = vector.broadcast %28 : vector<64x1xi1> to vector<64x4xi1>
    %30 = vector.broadcast %cst_16 : f32 to vector<64x4xf32>
    %31 = arith.select %29, %25, %30 : vector<64x4xi1>, vector<64x4xf32>
    %32 = vector.extract_strided_slice %31 {offsets = [0, 0], sizes = [16, 4], strides = [1, 1]} : vector<64x4xf32> to vector<16x4xf32>
    %33 = vector.extract_strided_slice %31 {offsets = [16, 0], sizes = [16, 4], strides = [1, 1]} : vector<64x4xf32> to vector<16x4xf32>
    %34 = arith.maximumf %32, %33 : vector<16x4xf32>
    %35 = vector.extract_strided_slice %31 {offsets = [32, 0], sizes = [16, 4], strides = [1, 1]} : vector<64x4xf32> to vector<16x4xf32>
    %36 = arith.maximumf %34, %35 : vector<16x4xf32>
    %37 = vector.extract_strided_slice %31 {offsets = [48, 0], sizes = [16, 4], strides = [1, 1]} : vector<64x4xf32> to vector<16x4xf32>
    %38 = arith.maximumf %36, %37 : vector<16x4xf32>
    %39 = tpu.concatenate %38, %38, %38, %38 in 0 : vector<16x4xf32>, vector<16x4xf32>, vector<16x4xf32>, vector<16x4xf32> -> vector<64x4xf32>
    %40 = arith.subf %31, %39 : vector<64x4xf32>
    %41 = math.exp %40 : vector<64x4xf32>
    %42 = vector.extract_strided_slice %41 {offsets = [0, 0], sizes = [16, 4], strides = [1, 1]} : vector<64x4xf32> to vector<16x4xf32>
    %43 = vector.extract_strided_slice %41 {offsets = [16, 0], sizes = [16, 4], strides = [1, 1]} : vector<64x4xf32> to vector<16x4xf32>
    %44 = arith.addf %42, %43 : vector<16x4xf32>
    %45 = vector.extract_strided_slice %41 {offsets = [32, 0], sizes = [16, 4], strides = [1, 1]} : vector<64x4xf32> to vector<16x4xf32>
    %46 = arith.addf %44, %45 : vector<16x4xf32>
    %47 = vector.extract_strided_slice %41 {offsets = [48, 0], sizes = [16, 4], strides = [1, 1]} : vector<64x4xf32> to vector<16x4xf32>
    %48 = arith.addf %46, %47 : vector<16x4xf32>
    %49 = tpu.reciprocal %48 {approx = true} : vector<16x4xf32> -> vector<16x4xf32>
    %50 = tpu.concatenate %49, %49, %49, %49 in 0 : vector<16x4xf32>, vector<16x4xf32>, vector<16x4xf32>, vector<16x4xf32> -> vector<64x4xf32>
    %51 = arith.mulf %41, %50 : vector<64x4xf32>
    %52 = vector.broadcast %2 : vector<64x1xf32> to vector<64x4xf32>
    %53 = arith.mulf %51, %52 : vector<64x4xf32>
    %54 = arith.truncf %53 : vector<64x4xf32> to vector<64x4xbf16>
    %cst_17 = arith.constant dense<0.000000e+00> : vector<64x32xf32>
    %55 = tpu.matmul %54, %16, %cst_17 {dimension_numbers = #tpu.dot_dimension_numbers<[1], [0], [0], [1], [0, 0, 1, 1], [], []>} : vector<64x4xbf16>, vector<4x32xbf16>, vector<64x32xf32> -> vector<64x32xf32>
    %56 = arith.mulf %55, %20 : vector<64x32xf32>
    %57 = vector.extract_strided_slice %56 {offsets = [0, 0], sizes = [16, 32], strides = [1, 1]} : vector<64x32xf32> to vector<16x32xf32>
    %58 = vector.extract_strided_slice %56 {offsets = [16, 0], sizes = [16, 32], strides = [1, 1]} : vector<64x32xf32> to vector<16x32xf32>
    %59 = arith.addf %57, %58 : vector<16x32xf32>
    %60 = vector.extract_strided_slice %56 {offsets = [32, 0], sizes = [16, 32], strides = [1, 1]} : vector<64x32xf32> to vector<16x32xf32>
    %61 = arith.addf %59, %60 : vector<16x32xf32>
    %62 = vector.extract_strided_slice %56 {offsets = [48, 0], sizes = [16, 32], strides = [1, 1]} : vector<64x32xf32> to vector<16x32xf32>
    %63 = arith.addf %61, %62 : vector<16x32xf32>
    %64 = arith.truncf %63 : vector<16x32xf32> to vector<16x32xbf16>
    %cst_18 = arith.constant dense<0.000000e+00> : vector<16x32xf32>
    %65 = tpu.matmul %64, %12, %cst_18 {dimension_numbers = #tpu.dot_dimension_numbers<[1], [0], [0], [1], [0, 0, 1, 1], [], []>} : vector<16x32xbf16>, vector<32x32xbf16>, vector<16x32xf32> -> vector<16x32xf32>
    %66 = arith.addf %0, %65 : vector<16x32xf32>
    %cst_19 = arith.constant dense<0.000000e+00> : vector<16xf32>
    %67 = vector.multi_reduction <add>, %66, %cst_19 [1] : vector<16x32xf32> to vector<16xf32>
    %68 = vector.shape_cast %67 : vector<16xf32> to vector<16x1xf32>
    %cst_20 = arith.constant 3.200000e+01 : f32
    %69 = vector.broadcast %cst_20 : f32 to vector<16x1xf32>
    %70 = arith.divf %68, %69 : vector<16x1xf32>
    %71 = vector.broadcast %70 : vector<16x1xf32> to vector<16x32xf32>
    %72 = arith.subf %66, %71 : vector<16x32xf32>
    %73 = arith.mulf %72, %72 : vector<16x32xf32>
    %cst_21 = arith.constant dense<0.000000e+00> : vector<16xf32>
    %74 = vector.multi_reduction <add>, %73, %cst_21 [1] : vector<16x32xf32> to vector<16xf32>
    %75 = vector.shape_cast %74 : vector<16xf32> to vector<16x1xf32>
    %cst_22 = arith.constant 3.200000e+01 : f32
    %76 = vector.broadcast %cst_22 : f32 to vector<16x1xf32>
    %77 = arith.divf %75, %76 : vector<16x1xf32>
    %78 = vector.broadcast %70 : vector<16x1xf32> to vector<16x32xf32>
    %79 = arith.subf %66, %78 : vector<16x32xf32>
    %cst_23 = arith.constant 9.99999974E-6 : f32
    %80 = vector.broadcast %cst_23 : f32 to vector<16x1xf32>
    %81 = arith.addf %77, %80 : vector<16x1xf32>
    %82 = math.rsqrt %81 : vector<16x1xf32>
    %83 = vector.broadcast %82 : vector<16x1xf32> to vector<16x32xf32>
    %84 = arith.mulf %79, %83 : vector<16x32xf32>
    %85 = vector.broadcast %5 : vector<1x32xf32> to vector<16x32xf32>
    %86 = arith.mulf %84, %85 : vector<16x32xf32>
    %87 = vector.broadcast %6 : vector<1x32xf32> to vector<16x32xf32>
    %88 = arith.addf %86, %87 : vector<16x32xf32>
    %89 = arith.truncf %88 : vector<16x32xf32> to vector<16x32xbf16>
    %cst_24 = arith.constant dense<0.000000e+00> : vector<16x128xf32>
    %90 = tpu.matmul %89, %13, %cst_24 {dimension_numbers = #tpu.dot_dimension_numbers<[1], [0], [0], [1], [0, 0, 1, 1], [], []>} : vector<16x32xbf16>, vector<32x128xbf16>, vector<16x128xf32> -> vector<16x128xf32>
    %91 = vector.broadcast %10 : vector<1x128xf32> to vector<16x128xf32>
    %92 = arith.addf %90, %91 : vector<16x128xf32>
    %cst_25 = arith.constant 5.000000e-01 : f32
    %93 = vector.broadcast %cst_25 : f32 to vector<16x128xf32>
    %94 = arith.mulf %93, %92 : vector<16x128xf32>
    %cst_26 = arith.constant 0.707106769 : f32
    %95 = vector.broadcast %cst_26 : f32 to vector<16x128xf32>
    %96 = arith.mulf %92, %95 : vector<16x128xf32>
    %97 = math.erf %96 : vector<16x128xf32>
    %cst_27 = arith.constant 1.000000e+00 : f32
    %98 = vector.broadcast %cst_27 : f32 to vector<16x128xf32>
    %99 = arith.addf %98, %97 : vector<16x128xf32>
    %100 = arith.mulf %94, %99 : vector<16x128xf32>
    %101 = arith.truncf %100 : vector<16x128xf32> to vector<16x128xbf16>
    %cst_28 = arith.constant dense<0.000000e+00> : vector<16x32xf32>
    %102 = tpu.matmul %101, %14, %cst_28 {dimension_numbers = #tpu.dot_dimension_numbers<[1], [0], [0], [1], [0, 0, 1, 1], [], []>} : vector<16x128xbf16>, vector<128x32xbf16>, vector<16x32xf32> -> vector<16x32xf32>
    %103 = vector.broadcast %9 : vector<1x32xf32> to vector<16x32xf32>
    %104 = arith.addf %102, %103 : vector<16x32xf32>
    %105 = arith.addf %88, %104 : vector<16x32xf32>
    %cst_29 = arith.constant dense<0.000000e+00> : vector<16xf32>
    %106 = vector.multi_reduction <add>, %105, %cst_29 [1] : vector<16x32xf32> to vector<16xf32>
    %107 = vector.shape_cast %106 : vector<16xf32> to vector<16x1xf32>
    %cst_30 = arith.constant 3.200000e+01 : f32
    %108 = vector.broadcast %cst_30 : f32 to vector<16x1xf32>
    %109 = arith.divf %107, %108 : vector<16x1xf32>
    %110 = vector.broadcast %109 : vector<16x1xf32> to vector<16x32xf32>
    %111 = arith.subf %105, %110 : vector<16x32xf32>
    %112 = arith.mulf %111, %111 : vector<16x32xf32>
    %cst_31 = arith.constant dense<0.000000e+00> : vector<16xf32>
    %113 = vector.multi_reduction <add>, %112, %cst_31 [1] : vector<16x32xf32> to vector<16xf32>
    %114 = vector.shape_cast %113 : vector<16xf32> to vector<16x1xf32>
    %cst_32 = arith.constant 3.200000e+01 : f32
    %115 = vector.broadcast %cst_32 : f32 to vector<16x1xf32>
    %116 = arith.divf %114, %115 : vector<16x1xf32>
    %117 = vector.broadcast %109 : vector<16x1xf32> to vector<16x32xf32>
    %118 = arith.subf %105, %117 : vector<16x32xf32>
    %cst_33 = arith.constant 9.99999974E-6 : f32
    %119 = vector.broadcast %cst_33 : f32 to vector<16x1xf32>
    %120 = arith.addf %116, %119 : vector<16x1xf32>
    %121 = math.rsqrt %120 : vector<16x1xf32>
    %122 = vector.broadcast %121 : vector<16x1xf32> to vector<16x32xf32>
    %123 = arith.mulf %118, %122 : vector<16x32xf32>
    %124 = vector.broadcast %7 : vector<1x32xf32> to vector<16x32xf32>
    %125 = arith.mulf %123, %124 : vector<16x32xf32>
    %126 = vector.broadcast %8 : vector<1x32xf32> to vector<16x32xf32>
    %127 = arith.addf %125, %126 : vector<16x32xf32>
    %128 = vector.broadcast %3 : vector<16x1xf32> to vector<16x32xf32>
    %129 = arith.mulf %128, %127 : vector<16x32xf32>
    %c0_34 = arith.constant 0 : index
    %c0_35 = arith.constant 0 : index
    %130 = vector.load %arg5[%c0_34, %c0_35] : memref<16x32xf32, #tpu.memory_space<vmem>>, vector<16x32xf32>
    tpu.vector_store %arg5[%c0_34, %c0_35], %129 {strides = array<i32>} : memref<16x32xf32, #tpu.memory_space<vmem>>, vector<16x32xf32>,
    return
  }
}

</mosaic_0001>

<bundles_post_ra>
// kernel: decoder_layer.1
= control target key start
LH: loop header
LB: loop body
LE: loop exit
PB: predicated region body
PF: predicated region fallthrough
CT: control target
= control target key end

     0   :  { %v1222_v1 = vmov 0.0   ;;  %vm1223_vm0 = vmmov 0   ;;  %vm131_vm1 = vcmask 523264   ;;  %s1506_s0 = inlined_call_operand.vmem [shape: f32[16,32], index: 0, kind: input, shape index: {}]   ;;  %s1507_s1 = inlined_call_operand.vmem [shape: bf16[80,64], index: 1, kind: input, shape index: {}]   ;;  %s1508_s2 = inlined_call_operand.vmem [shape: f32[80,1], index: 2, kind: input, shape index: {}]   ;;  %s1509_s3 = inlined_call_operand.vmem [shape: bf16[304,128], index: 3, kind: input, shape index: {}]   ;;  %s1510_s4 = inlined_call_operand.vmem [shape: f32[8,128], index: 4, kind: input, shape index: {}]   ;;  %s1511_s5 = inlined_call_operand.hbm [shape: f32[16,32], index: 5, kind: output, shape index: {}]  }
   0x1   :  { %v1143_v0 = vld [vmem:[%s1509_s3] sm:$0xff]   ;;  %1046 = vmatprep.subr.bf16.mxu0 %v1222_v1  ;;  %v1144_v2 = vld [vmem:[%s1509_s3 + $0x8] sm:$0xff]   ;;  %1054 = vmatprep.mubr.msk.bf16.mxu0 %vm1223_vm0, %v1222_v1  ;;  %v1145_v3 = vld [vmem:[%s1509_s3 + $0x10] sm:$0xff]  }
   0x2   :  { %1047 = vmatpush3.bf16.msra.mxu0 %v1143_v0  ;;  %v1146_v4 = vld [vmem:[%s1509_s3 + $0x18] sm:$0xff]   ;;  %v1147_v5 = vld [vmem:[%s1507_s1] sm:$0xff]  }
   0x3   :  { %1048 = vmatprep.subr.bf16.mxu0 %v1222_v1 }
   0x6   :  { %1049 = vmatpush3.bf16.msra.mxu0 %v1144_v2 }
   0x7   :  { %1050 = vmatprep.subr.bf16.mxu0 %v1222_v1 }
   0xa   :  { %1051 = vmatpush3.bf16.msra.mxu0 %v1145_v3 }
   0xb   :  { %1052 = vmatprep.subr.bf16.mxu0 %v1222_v1 }
   0xe   :  { %1053 = vmatpush3.bf16.msra.mxu0 %v1146_v4 }
   0xf   :  { %1112 = vmatprep.subr.bf16.mxu0 %v1222_v1 }
  0x11   :  { %1055 = vmatmul.mubr.msk.bf16.vlgmr.msra.gmra.mrb[0].mxu0 %vm131_vm1, %v1147_v5 }
  0x12   :  { %1058 = vmatprep.mubr.msk.bf16.mxu0 %vm1223_vm0, %v1222_v1 }
  0x13   :  { %10 = vsyncpa [#allocation3], 0  ;;  %v1148_v6 = vld [vmem:[%s1507_s1 + $0x8] sm:$0xff]   ;;  %v1149_v7 = vld [vmem:[%s1507_s1 + $0x10] sm:$0xff]   ;;  %s1224_s11 = smov 64   ;;  %v1225_v18 = vmov 0  }
  0x14   :  { %v1150_v8 = vld [vmem:[%s1507_s1 + $0x18] sm:$0xff]   ;;  %v1151_v9 = vld [vmem:[%s1507_s1 + $0x20] sm:$0xff]   ;;  %1141 = vset.pattern.permute.xlu0 %v1225_v18  ;;  %1142 = vset.pattern.permute.xlu1 %v1225_v18  ;;  %v1153_v32 = vld [vmem:[%s1509_s3 + $0x88] sm:$0xff]   ;;  %s1226_s6 = smov 96   ;;  %vm288_vm10 = vcmask 261120   ;;  %vm533_vm11 = vcmask 1041408  }
  0x15   :  { %v1152_v31 = vld [vmem:[%s1509_s3 + $0x80] sm:$0xff]   ;;  %v27_v49 = vld [vmem:[%s1508_s2 + $0x18] sm:$0xff]  ;;  %v25_v53 = vld [vmem:[%s1508_s2 + $0x8] sm:$0xff] }
  0x16   :  { %1074 = vmatprep.subr.bf16.mxu1 %v1152_v31  ;;  %v24_v45 = vld [vmem:[%s1508_s2] sm:$0xff]  ;;  %vm369_vm3 = vcmp.gt.f32.partialorder %v27_v49, 0.0  ;;  %v29_v54 = vld [vmem:[%s1508_s2 + $0x28] sm:$0xff]  ;;  %vm367_vm4 = vcmp.gt.f32.partialorder %v25_v53, 0.0  ;;  %v26_v59 = vld [vmem:[%s1508_s2 + $0x10] sm:$0xff] }
  0x17   :  { %1075 = vmatpush3.bf16.msra.mxu1 %v1152_v31  ;;  %vm366_vm2 = vcmp.gt.f32.partialorder %v24_v45, 0.0  ;;  %v377_v57 = vsel %vm369_vm3, 1, %v1225_v18  ;;  %vm371_vm5 = vcmp.gt.f32.partialorder %v29_v54, 0.0  ;;  %v31_v60 = vld [vmem:[%s1508_s2 + $0x38] sm:$0xff]  ;;  %v375_v61 = vsel %vm367_vm4, 1, %v1225_v18  ;;  %v28_v63 = vld [vmem:[%s1508_s2 + $0x20] sm:$0xff] }
  0x18   :  { %1076 = vmatprep.subr.bf16.mxu1 %v1153_v32  ;;  %v374_v51 = vsel %vm366_vm2, 1, %v1225_v18  ;;  %v379_v62 = vsel %vm371_vm5, 1, %v1225_v18  ;;  %vm368_vm6 = vcmp.gt.f32.partialorder %v26_v59, 0.0  ;;  %vm373_vm7 = vcmp.gt.f32.partialorder %v31_v60, 0.0  ;;  %v30_v3 = vld [vmem:[%s1508_s2 + $0x30] sm:$0xff] }
  0x19   :  { %1059 = vmatmul.mubr.msk.bf16.gmra.mrb[4].mxu0 %vm131_vm1, %v1148_v6  ;;  %v376_v0 = vsel %vm368_vm6, 1, %v1225_v18  ;;  %v381_v2 = vsel %vm373_vm7, 1, %v1225_v18  ;;  %vm370_vm8 = vcmp.gt.f32.partialorder %v28_v63, 0.0  ;;  %vm372_vm9 = vcmp.gt.f32.partialorder %v30_v3, 0.0 }
  0x1a   :  { %1062 = vmatprep.mubr.msk.bf16.mxu0 %vm1223_vm0, %v1222_v1  ;;  %v378_v4 = vsel %vm370_vm8, 1, %v1225_v18  ;;  %v380_v5 = vsel %vm372_vm9, 1, %v1225_v18  ;;  %vm520_vm5 = vcmask 31744  }
  0x1b   :  { %1077 = vmatpush3.bf16.msra.mxu1 %v1153_v32 }
  0x21   :  { %1063 = vmatmul.mubr.msk.bf16.gmra.mrb[8].mxu0 %vm131_vm1, %v1149_v7 }
  0x22   :  { %1066 = vmatprep.mubr.msk.bf16.mxu0 %vm1223_vm0, %v1222_v1 }
  0x29   :  { %1067 = vmatmul.mubr.msk.bf16.gmra.mrb[12].mxu0 %vm131_vm1, %v1150_v8 }
  0x2a   :  { %1070 = vmatprep.mubr.msk.bf16.mxu0 %vm1223_vm0, %v1222_v1 }
  0x31   :  { %1071 = vmatmul.mubr.msk.bf16.gmra.mrb[16].mxu0 %vm131_vm1, %v1151_v9 }
  0x32   :  { %1128 = vmatprep.mubr.msk.bf16.mxu0 %vm1223_vm0, %v1222_v1 }
  0xe4   :  { %v1309_v10 = vpop.f32.mrb[0].mxu0 }
  0xe5   :  { %228 = vrot.lane.b32.xlu0 %v1309_v10, %s1224_s11  ;;  %v1056_v11 = vpop.f32.mrb[1].mxu0 }
  0xe6   :  { %v1313_v12 = vpop.f32.mrb[2].mxu0 }
  0xe7   :  { %v1057_v13 = vpop.f32.mrb[3].mxu0 }
  0xe9   :  { %230 = vrot.lane.b32.xlu0 %v1313_v12, %s1224_s11 }
  0xec   :  { %v1317_v14 = vpop.f32.mrb[4].mxu0 }
  0xed   :  { %232 = vrot.lane.b32.xlu1 %v1317_v14, %s1224_s11  ;;  %v1060_v15 = vpop.f32.mrb[5].mxu0 }
  0xee   :  { %v1321_v16 = vpop.f32.mrb[6].mxu0 }
  0xef   :  { %v1061_v17 = vpop.f32.mrb[7].mxu0 }
  0xf1   :  { %234 = vrot.lane.b32.xlu1 %v1321_v16, %s1224_s11 }
  0xf4   :  { %v1327_v19 = vpop.f32.mrb[8].mxu0 }
  0xf5   :  { %236 = vrot.lane.b32.xlu0 %v1327_v19, %s1224_s11  ;;  %v1064_v20 = vpop.f32.mrb[9].mxu0 }
  0xf6   :  { %v1331_v21 = vpop.f32.mrb[10].mxu0 }
  0xf7   :  { %238 = vrot.lane.b32.xlu1 %v1331_v21, %s1224_s11  ;;  %v1065_v22 = vpop.f32.mrb[11].mxu0 }
  0xfc   :  { %v1335_v23 = vpop.f32.mrb[12].mxu0 }
  0xfd   :  { %240 = vrot.lane.b32.xlu0 %v1335_v23, %s1224_s11  ;;  %v1068_v24 = vpop.f32.mrb[13].mxu0 }
  0xfe   :  { %v1339_v25 = vpop.f32.mrb[14].mxu0 }
  0xff   :  { %242 = vrot.lane.b32.xlu1 %v1339_v25, %s1224_s11  ;;  %v1069_v26 = vpop.f32.mrb[15].mxu0 }
 0x104   :  { %v213_v27 = vpop.f32.mrb[16].mxu0 }
 0x105   :  { %v1072_v28 = vpop.f32.mrb[17].mxu0 }
 0x106   :  { %v216_v29 = vpop.f32.mrb[18].mxu0 }
 0x107   :  { %v1073_v30 = vpop.f32.mrb[19].mxu0 }
 0x157   :  { %v229_v33 = vpop.permute.xlu0 %228 }
 0x158   :  { %v252_v35 = vmul.f32 %v229_v33, %v213_v27 }
 0x15b   :  { %v231_v34 = vpop.permute.xlu0 %230 }
 0x15c   :  { %v253_v36 = vmul.f32 %v231_v34, %v216_v29 }
 0x15e   :  { %v260_v37 = vpack.c.bf16 %v253_v36, %v252_v35 }
 0x15f   :  { %v233_v38 = vpop.permute.xlu1 %232 }
 0x160   :  { %268 = vrot.lane.b32.xlu0 %v260_v37, %s1224_s11  ;;  %v254_v40 = vmul.f32 %v233_v38, %v213_v27 }
 0x163   :  { %v235_v39 = vpop.permute.xlu1 %234 }
 0x164   :  { %v255_v41 = vmul.f32 %v235_v39, %v216_v29 }
 0x166   :  { %v261_v42 = vpack.c.bf16 %v255_v41, %v254_v40 }
 0x167   :  { %v237_v43 = vpop.permute.xlu0 %236 }
 0x168   :  { %270 = vrot.lane.b32.xlu1 %v261_v42, %s1224_s11  ;;  %v256_v46 = vmul.f32 %v237_v43, %v213_v27 }
 0x169   :  { %v239_v44 = vpop.permute.xlu1 %238 }
 0x16a   :  { %v257_v47 = vmul.f32 %v239_v44, %v216_v29 }
 0x16c   :  { %v262_v48 = vpack.c.bf16 %v257_v47, %v256_v46 }
 0x16e   :  { %272 = vrot.lane.b32.xlu0 %v262_v48, %s1224_s11 }
 0x16f   :  { %v241_v50 = vpop.permute.xlu0 %240 }
 0x170   :  { %v258_v55 = vmul.f32 %v241_v50, %v213_v27 }
 0x171   :  { %v243_v52 = vpop.permute.xlu1 %242 }
 0x172   :  { %v259_v56 = vmul.f32 %v243_v52, %v216_v29  ;;  %383 = vperm.xlu0 %1141, %v374_v51  }
 0x174   :  { %v263_v58 = vpack.c.bf16 %v259_v56, %v258_v55 }
 0x176   :  { %274 = vrot.lane.b32.xlu1 %v263_v58, %s1224_s11  ;;  %392 = vperm.xlu0 %1141, %v377_v57  }
 0x17a   :  { %386 = vperm.xlu1 %1142, %v375_v61   ;;  %398 = vperm.xlu0 %1141, %v379_v62  }
 0x17e   :  { %389 = vperm.xlu1 %1142, %v376_v0   ;;  %404 = vperm.xlu0 %1141, %v381_v2  }
 0x182   :  { %395 = vperm.xlu1 %1142, %v378_v4   ;;  %475 = vperm.xlu0 %1141, %v25_v53  }
 0x186   :  { %401 = vperm.xlu1 %1142, %v380_v5   ;;  %485 = vperm.xlu0 %1141, %v27_v49  }
 0x18a   :  { %470 = vperm.xlu1 %1142, %v24_v45   ;;  %495 = vperm.xlu0 %1141, %v29_v54  }
 0x18e   :  { %480 = vperm.xlu1 %1142, %v26_v59   ;;  %505 = vperm.xlu0 %1141, %v31_v60  }
 0x192   :  { %490 = vperm.xlu1 %1142, %v28_v63   ;;  %604 = vrot.lane.b32.xlu0 %v1313_v12, %s1226_s6 }
 0x196   :  { %500 = vperm.xlu1 %1142, %v30_v3   ;;  %608 = vrot.lane.b32.xlu0 %v1321_v16, %s1226_s6 }
 0x19a   :  { %602 = vrot.lane.b32.xlu1 %v1309_v10, %s1226_s6  ;;  %612 = vrot.lane.b32.xlu0 %v1331_v21, %s1226_s6  ;;  %v71_v10 = vld [vmem:[%s1509_s3 + $0x90] sm:$0x3] }
 0x19b   :  { %1132 = vmatprep.subr.msk.bf16.mxu1 %vm533_vm11, %v71_v10  ;;  %v535_v11 = vsel %vm533_vm11, %v71_v10, 0 }
 0x19e   :  { %606 = vrot.lane.b32.xlu1 %v1317_v14, %s1226_s6  ;;  %616 = vrot.lane.b32.xlu0 %v1339_v25, %s1226_s6 }
 0x1a2   :  { %610 = vrot.lane.b32.xlu1 %v1327_v19, %s1226_s6 }
 0x1a6   :  { %614 = vrot.lane.b32.xlu1 %v1335_v23, %s1226_s6 }
 0x1d2   :  { %v269_v6 = vpop.permute.xlu0 %268 }
 0x1d3   :  { %1078 = vmatprep.mubr.msk.bf16.mxu1 %vm288_vm10, %v269_v6 }
 0x1da   :  { %v271_v7 = vpop.permute.xlu1 %270 }
 0x1db   :  { %1079 = vmatmul.mubr.msk.bf16.vlgmr.msra.gmra.mrb[0].mxu1 %vm288_vm10, %v271_v7 }
 0x1dc   :  { %1087 = vmatpush3.bf16.msra.mxu1 %v535_v11 }
 0x1dd   :  { %1096 = vmatprep.subr.bf16.mxu1 %v1222_v1 }
 0x1e0   :  { %v273_v8 = vpop.permute.xlu0 %272 }
 0x1e1   :  { %1082 = vmatprep.mubr.msk.bf16.mxu1 %vm288_vm10, %v273_v8 }
 0x1e8   :  { %v275_v9 = vpop.permute.xlu1 %274 }
 0x1e9   :  { %1083 = vmatmul.mubr.msk.bf16.gmra.mrb[4].mxu1 %vm288_vm10, %v275_v9 }
 0x1f1   :  { %v384_v13 = vpop.permute.xlu0 %383 }
 0x1f2   :  { %vm406_vm13 = vcmp.eq.s32.totalorder %v384_v13, 1 }
 0x1f5   :  { %v393_v15 = vpop.permute.xlu0 %392 }
 0x1f6   :  { %vm409_vm14 = vcmp.eq.s32.totalorder %v393_v15, 1 }
 0x1f9   :  { %v387_v12 = vpop.permute.xlu1 %386  ;;  %v399_v27 = vpop.permute.xlu0 %398 }
 0x1fa   :  { %vm407_vm15 = vcmp.eq.s32.totalorder %v387_v12, 1  ;;  %vm411_vm2 = vcmp.eq.s32.totalorder %v399_v27, 1 }
 0x1fd   :  { %v390_v14 = vpop.permute.xlu1 %389  ;;  %v405_v35 = vpop.permute.xlu0 %404 }
 0x1fe   :  { %vm408_vm12 = vcmp.eq.s32.totalorder %v390_v14, 1  ;;  %vm413_vm4 = vcmp.eq.s32.totalorder %v405_v35, 1 }
 0x201   :  { %v396_v26 = vpop.permute.xlu1 %395  ;;  %v476_v4 = vpop.permute.xlu0 %475 }
 0x202   :  { %vm410_vm1 = vcmp.eq.s32.totalorder %v396_v26, 1 }
 0x205   :  { %v402_v30 = vpop.permute.xlu1 %401  ;;  %v486_v12 = vpop.permute.xlu0 %485 }
 0x206   :  { %vm412_vm3 = vcmp.eq.s32.totalorder %v402_v30, 1 }
 0x209   :  { %v471_v3 = vpop.permute.xlu1 %470  ;;  %v496_v15 = vpop.permute.xlu0 %495 }
 0x20d   :  { %v481_v11 = vpop.permute.xlu1 %480  ;;  %v506_v26 = vpop.permute.xlu0 %505 }
 0x211   :  { %v491_v13 = vpop.permute.xlu1 %490 }
 0x2ae   :  { %v1080_v16 = vpop.f32.mrb[0].mxu1 }
 0x2af   :  { %v416_v17 = vsel %vm408_vm12, %v1080_v16, -3.4028235e+38  ;;  %v335_v18 = vpop.f32.mrb[1].mxu1 }
 0x2b0   :  { %v414_v19 = vsel %vm406_vm13, %v335_v18, -3.4028235e+38  ;;  %v1081_v20 = vpop.f32.mrb[2].mxu1 }
 0x2b1   :  { %v422_v21 = vmax.f32 %v414_v19, %v416_v17  ;;  %v417_v22 = vsel %vm409_vm14, %v1081_v20, -3.4028235e+38  ;;  %v338_v23 = vpop.f32.mrb[3].mxu1 }
 0x2b2   :  { %v415_v24 = vsel %vm407_vm15, %v338_v23, -3.4028235e+38 }
 0x2b3   :  { %v423_v25 = vmax.f32 %v415_v24, %v417_v22 }
 0x2bc   :  { %v1084_v28 = vpop.f32.mrb[4].mxu1 }
 0x2bd   :  { %v351_v29 = vpop.f32.mrb[5].mxu1  ;;  %v420_v36 = vsel %vm412_vm3, %v1084_v28, -3.4028235e+38 }
 0x2be   :  { %v418_v31 = vsel %vm410_vm1, %v351_v29, -3.4028235e+38  ;;  %v1085_v32 = vpop.f32.mrb[6].mxu1 }
 0x2bf   :  { %v424_v33 = vmax.f32 %v422_v21, %v418_v31  ;;  %v354_v34 = vpop.f32.mrb[7].mxu1  ;;  %v421_v40 = vsel %vm413_vm4, %v1085_v32, -3.4028235e+38  ;;  %v501_v21 = vpop.permute.xlu1 %500 }
 0x2c0   :  { %v419_v37 = vsel %vm411_vm2, %v354_v34, -3.4028235e+38 }
 0x2c1   :  { %v426_v38 = vmax.f32 %v424_v33, %v420_v36  ;;  %v425_v39 = vmax.f32 %v423_v25, %v419_v37 }
 0x2c3   :  { %v428_v41 = vsub.f32 %v414_v19, %v426_v38  ;;  %v430_v42 = vsub.f32 %v416_v17, %v426_v38  ;;  %v432_v43 = vsub.f32 %v418_v31, %v426_v38  ;;  %v434_v44 = vsub.f32 %v420_v36, %v426_v38 }
 0x2c4   :  { %v427_v45 = vmax.f32 %v425_v39, %v421_v40  ;;  %v1154_v39 = vld [vmem:[%s1509_s3 + $0x20] sm:$0xff]  }
 0x2c5   :  { %v436_v46 = vmul.f32 1.442695, %v428_v41  ;;  %v440_v47 = vmul.f32 1.442695, %v430_v42  ;;  %v444_v48 = vmul.f32 1.442695, %v432_v43  ;;  %v603_v41 = vpop.permute.xlu1 %602  ;;  %v605_v42 = vpop.permute.xlu0 %604 }
 0x2c6   :  { %v448_v49 = vmul.f32 1.442695, %v434_v44  ;;  %v429_v50 = vsub.f32 %v415_v24, %v427_v45  ;;  %v431_v51 = vsub.f32 %v417_v22, %v427_v45  ;;  %v433_v52 = vsub.f32 %v419_v37, %v427_v45 }
 0x2c7   :  { %1166 = vpow2.f32 %v436_v46  ;;  %v435_v53 = vsub.f32 %v421_v40, %v427_v45  ;;  %v1155_v40 = vld [vmem:[%s1509_s3 + $0x28] sm:$0xff]  }
 0x2c8   :  { %1168 = vpow2.f32 %v440_v47  ;;  %v438_v54 = vmul.f32 1.442695, %v429_v50  ;;  %v442_v55 = vmul.f32 1.442695, %v431_v51  ;;  %v446_v56 = vmul.f32 1.442695, %v433_v52 }
 0x2c9   :  { %1170 = vpow2.f32 %v444_v48  ;;  %v450_v57 = vmul.f32 1.442695, %v435_v53  ;;  %v607_v43 = vpop.permute.xlu1 %606  ;;  %v609_v45 = vpop.permute.xlu0 %608 }
 0x2ca   :  { %1172 = vpow2.f32 %v448_v49 }
 0x2cb   :  { %1174 = vpow2.f32 %v438_v54 }
 0x2cc   :  { %1176 = vpow2.f32 %v442_v55 }
 0x2cd   :  { %1178 = vpow2.f32 %v446_v56  ;;  %v611_v54 = vpop.permute.xlu1 %610  ;;  %v613_v56 = vpop.permute.xlu0 %612 }
 0x2ce   :  { %1180 = vpow2.f32 %v450_v57 }
 0x2d1   :  { %v1167_v58 = vpop.eup %1166 }
 0x2d2   :  { %v1169_v59 = vpop.eup %1168 }
 0x2d3   :  { %v1171_v60 = vpop.eup %1170  ;;  %v452_v61 = vadd.f32 %v1169_v59, %v1167_v58 }
 0x2d4   :  { %v1173_v62 = vpop.eup %1172 }
 0x2d5   :  { %v1175_v63 = vpop.eup %1174  ;;  %v454_v0 = vadd.f32 %v1171_v60, %v452_v61  ;;  %v615_v61 = vpop.permute.xlu1 %614 }
 0x2d6   :  { %v1177_v2 = vpop.eup %1176 }
 0x2d7   :  { %v456_v5 = vadd.f32 %v1173_v62, %v454_v0  ;;  %v453_v6 = vadd.f32 %v1177_v2, %v1175_v63  ;;  %v1179_v7 = vpop.eup %1178 }
 0x2d8   :  { %v1181_v9 = vpop.eup %1180 }
 0x2d9   :  { %1182 = vrcp.f32 %v456_v5  ;;  %v455_v8 = vadd.f32 %v1179_v7, %v453_v6 }
 0x2db   :  { %v457_v10 = vadd.f32 %v1181_v9, %v455_v8 }
 0x2dd   :  { %1184 = vrcp.f32 %v457_v10 }
 0x2e3   :  { %v1183_v14 = vpop.eup %1182 }
 0x2e4   :  { %v460_v16 = vmul.f32 %v1183_v14, %v1167_v58  ;;  %v462_v17 = vmul.f32 %v1183_v14, %v1169_v59  ;;  %v464_v18 = vmul.f32 %v1183_v14, %v1171_v60  ;;  %v466_v19 = vmul.f32 %v1183_v14, %v1173_v62 }
 0x2e6   :  { %v508_v27 = vmul.f32 %v471_v3, %v460_v16  ;;  %v510_v28 = vmul.f32 %v481_v11, %v462_v17  ;;  %v512_v29 = vmul.f32 %v491_v13, %v464_v18  ;;  %v514_v30 = vmul.f32 %v501_v21, %v466_v19  ;;  %v617_v3 = vpop.permute.xlu0 %616  ;;  %v23_v11 = vld [vmem:[%s1506_s0 + $0x8] sm:$0xff] }
 0x2e7   :  { %v1185_v20 = vpop.eup %1184 }
 0x2e8   :  { %v461_v22 = vmul.f32 %v1185_v20, %v1175_v63  ;;  %v463_v23 = vmul.f32 %v1185_v20, %v1177_v2  ;;  %v465_v24 = vmul.f32 %v1185_v20, %v1179_v7  ;;  %v467_v25 = vmul.f32 %v1185_v20, %v1181_v9  ;;  %v22_v9 = vld [vmem:[%s1506_s0] sm:$0xff] }
 0x2ea   :  { %v509_v31 = vmul.f32 %v476_v4, %v461_v22  ;;  %v511_v32 = vmul.f32 %v486_v12, %v463_v23  ;;  %v513_v33 = vmul.f32 %v496_v15, %v465_v24  ;;  %v515_v34 = vmul.f32 %v506_v26, %v467_v25 }
 0x2ec   :  { %v516_v35 = vpack.c.bf16 %v509_v31, %v508_v27  ;;  %v517_v36 = vpack.c.bf16 %v511_v32, %v510_v28  ;;  %v518_v37 = vpack.c.bf16 %v513_v33, %v512_v29  ;;  %v519_v38 = vpack.c.bf16 %v515_v34, %v514_v30  ;;  %v1156_v29 = vld [vmem:[%s1509_s3 + $0x30] sm:$0xff]   ;;  %v1157_v30 = vld [vmem:[%s1509_s3 + $0x38] sm:$0xff]   ;;  %v1158_v31 = vld [vmem:[%s1509_s3 + $0x40] sm:$0xff]  }
 0x2ed   :  { %1113 = vmatpush3.bf16.msra.mxu0 %v1158_v31  ;;  %v1159_v32 = vld [vmem:[%s1509_s3 + $0x48] sm:$0xff]   ;;  %v1160_v33 = vld [vmem:[%s1509_s3 + $0x50] sm:$0xff]   ;;  %v1161_v34 = vld [vmem:[%s1509_s3 + $0x58] sm:$0xff]  }
 0x2ee   :  { %1088 = vmatprep.mubr.msk.bf16.mxu1 %vm520_vm5, %v516_v35  ;;  %1114 = vmatprep.subr.bf16.mxu0 %v1222_v1 }
 0x2ef   :  { %1089 = vmatmul.mubr.msk.bf16.vlgmr.msra.gmra.mrb[8].mxu1 %vm520_vm5, %v517_v36 }
 0x2f0   :  { %1092 = vmatprep.mubr.msk.bf16.mxu1 %vm520_vm5, %v518_v37  ;;  %1097 = vmatpush3.bf16.msra.mxu1 %v1154_v39  ;;  %v726_v37 = vlaneseq }
 0x2f1   :  { %1098 = vmatprep.subr.bf16.mxu1 %v1222_v1  ;;  %1115 = vmatpush3.bf16.msra.mxu0 %v1159_v32 }
 0x2f2   :  { %1116 = vmatprep.subr.bf16.mxu0 %v1222_v1 }
 0x2f4   :  { %1099 = vmatpush3.bf16.msra.mxu1 %v1155_v40 }
 0x2f5   :  { %1104 = vmatprep.subr.bf16.mxu1 %v1222_v1  ;;  %1117 = vmatpush3.bf16.msra.mxu0 %v1160_v33 }
 0x2f6   :  { %1118 = vmatprep.subr.bf16.mxu0 %v1222_v1 }
 0x2f7   :  { %1093 = vmatmul.mubr.msk.bf16.gmra.mrb[12].mxu1 %vm520_vm5, %v519_v38 }
 0x2f8   :  { %1100 = vmatprep.mubr.msk.bf16.mxu1 %vm1223_vm0, %v1222_v1 }
 0x2f9   :  { %1119 = vmatpush3.bf16.msra.mxu0 %v1161_v34 }
 0x2fa   :  { %1120 = vmatprep.subr.bf16.mxu0 %v1222_v1 }
 0x3c2   :  { %v1090_v44 = vpop.f32.mrb[8].mxu1 }
 0x3c3   :  { %v628_v46 = vmul.f32 %v1090_v44, %v607_v43  ;;  %v571_v47 = vpop.f32.mrb[9].mxu1  ;;  %v1453_v44 = vld [vmem:[%s1510_s4] sm:$0xff] }
 0x3c4   :  { %v626_v48 = vmul.f32 %v603_v41, %v571_v47  ;;  %v1091_v49 = vpop.f32.mrb[10].mxu1 }
 0x3c5   :  { %v629_v50 = vmul.f32 %v1091_v49, %v609_v45  ;;  %v574_v51 = vpop.f32.mrb[11].mxu1 }
 0x3c6   :  { %v634_v52 = vadd.f32 %v628_v46, %v626_v48  ;;  %v627_v53 = vmul.f32 %v605_v42, %v574_v51  ;;  %v1447_v42 = vshrl.u32 %v726_v37, 7 }
 0x3c8   :  { %v635_v55 = vadd.f32 %v629_v50, %v627_v53  ;;  %v728_v43 = vsub.s32 0, %v1447_v42  ;;  %v734_v46 = vsub.s32 1, %v1447_v42 }
 0x3ca   :  { %v1094_v57 = vpop.f32.mrb[12].mxu1  ;;  %v729_v45 = vrot.slane %v1453_v44, %v728_v43 }
 0x3cb   :  { %v587_v58 = vpop.f32.mrb[13].mxu1  ;;  %v632_v63 = vmul.f32 %v1094_v57, %v615_v61  ;;  %v1162_v57 = vld [vmem:[%s1509_s3 + $0x60] sm:$0xff]   ;;  %v741_v61 = vsub.s32 5, %v1447_v42 }
 0x3cc   :  { %v630_v59 = vmul.f32 %v611_v54, %v587_v58  ;;  %v1095_v60 = vpop.f32.mrb[14].mxu1  ;;  %1121 = vmatpush3.bf16.msra.mxu0 %v1162_v57  ;;  %v1163_v58 = vld [vmem:[%s1509_s3 + $0x68] sm:$0xff]  }
 0x3cd   :  { %v590_v62 = vpop.f32.mrb[15].mxu1  ;;  %v633_v5 = vmul.f32 %v1095_v60, %v617_v3  ;;  %1122 = vmatprep.subr.bf16.mxu0 %v1222_v1  ;;  %v1165_v60 = vld [vmem:[%s1509_s3 + $0x78] sm:$0xff]  }
 0x3ce   :  { %v636_v0 = vadd.f32 %v634_v52, %v630_v59  ;;  %v631_v2 = vmul.f32 %v613_v56, %v590_v62  ;;  %v735_v52 = vrot.slane %v1453_v44, %v734_v46  ;;  %v1164_v59 = vld [vmem:[%s1509_s3 + $0x70] sm:$0xff]   ;;  %v742_v62 = vrot.slane %v1453_v44, %v741_v61 }
 0x3d0   :  { %v638_v4 = vadd.f32 %v636_v0, %v632_v63  ;;  %v637_v6 = vadd.f32 %v635_v55, %v631_v2  ;;  %1123 = vmatpush3.bf16.msra.mxu0 %v1163_v58 }
 0x3d1   :  { %1124 = vmatprep.subr.bf16.mxu0 %v1222_v1 }
 0x3d2   :  { %v639_v7 = vadd.f32 %v637_v6, %v633_v5 }
 0x3d4   :  { %v640_v8 = vpack.c.bf16 %v639_v7, %v638_v4  ;;  %1125 = vmatpush3.bf16.msra.mxu0 %v1164_v59 }
 0x3d5   :  { %1126 = vmatprep.subr.bf16.mxu0 %v1222_v1 }
 0x3d6   :  { %1101 = vmatmul.mubr.msk.bf16.vlgmr.msra.gmra.mrb[16].mxu1 %vm288_vm10, %v640_v8 }
 0x3d7   :  { %1108 = vmatprep.mubr.msk.bf16.mxu1 %vm1223_vm0, %v1222_v1  ;;  %1105 = vmatpush3.bf16.msra.mxu1 %v1156_v29 }
 0x3d8   :  { %1106 = vmatprep.subr.bf16.mxu1 %v1222_v1  ;;  %1127 = vmatpush3.bf16.msra.mxu0 %v1165_v60 }
 0x3db   :  { %1107 = vmatpush3.bf16.msra.mxu1 %v1157_v30 }
 0x4a9   :  { %v690_v10 = vpop.f32.mrb[16].mxu1 }
 0x4aa   :  { %v697_v12 = vadd.f32 %v690_v10, %v22_v9  ;;  %v1102_v13 = vpop.f32.mrb[17].mxu1 }
 0x4ab   :  { %v693_v14 = vpop.f32.mrb[18].mxu1 }
 0x4ac   :  { %v698_v15 = vadd.f32 %v693_v14, %v23_v11  ;;  %v1103_v16 = vpop.f32.mrb[19].mxu1  ;;  %v699_v17 = vsel %vm288_vm10, %v697_v12, 0.0 }
 0x4ad   :  { %700 = vadd.xlane.f32.xlu1 %v699_v17  ;;  %v812_v16 = vsub.s32 4, %v1447_v42 }
 0x4ae   :  { %v702_v18 = vsel %vm288_vm10, %v698_v15, 0.0 }
 0x4af   :  { %703 = vadd.xlane.f32.xlu0 %v702_v18  ;;  %v813_v17 = vrot.slane %v1453_v44, %v812_v16 }
 0x53a   :  { %v701_v19 = vpop.xlane.xlu1 %700 }
 0x53b   :  { %v706_v20 = vmul.f32 0.03125, %v701_v19 }
 0x53c   :  { %v704_v21 = vpop.xlane.xlu0 %703 }
 0x53d   :  { %v708_v22 = vsub.f32 %v697_v12, %v706_v20  ;;  %v707_v23 = vmul.f32 0.03125, %v704_v21 }
 0x53f   :  { %v709_v24 = vsub.f32 %v698_v15, %v707_v23  ;;  %v710_v25 = vmul.f32 %v708_v22, %v708_v22 }
 0x541   :  { %v712_v26 = vsel %vm288_vm10, %v710_v25, 0.0  ;;  %v711_v27 = vmul.f32 %v709_v24, %v709_v24 }
 0x542   :  { %713 = vadd.xlane.f32.xlu0 %v712_v26 }
 0x543   :  { %v715_v28 = vsel %vm288_vm10, %v711_v27, 0.0 }
 0x544   :  { %716 = vadd.xlane.f32.xlu1 %v715_v28 }
 0x5cf   :  { %v714_v35 = vpop.xlane.xlu0 %713 }
 0x5d0   :  { %v718_v36 = vmul.f32 0.03125, %v714_v35 }
 0x5d1   :  { %v717_v38 = vpop.xlane.xlu1 %716 }
 0x5d2   :  { %v720_v39 = vadd.f32 1e-05, %v718_v36  ;;  %v719_v40 = vmul.f32 0.03125, %v717_v38  ;;  %v33_v38 = vld [vmem:[%s1508_s2 + $0x48] sm:$0xff] }
 0x5d4   :  { %1186 = vrsqrt.f32 %v720_v39  ;;  %v721_v41 = vadd.f32 1e-05, %v719_v40  ;;  %v32_v39 = vld [vmem:[%s1508_s2 + $0x40] sm:$0xff]  ;;  %s1227_s2 = smov [#allocation2]  }
 0x5d5   :  { %s962_s13 = sshll.u32 %s1227_s2, 4  ;;  %s963_s13 = int_to_ptr.vmem [resolvable:$true] %s962_s13 }
 0x5d6   :  { %1188 = vrsqrt.f32 %v721_v41  ;;  %s1198_s14 = scalar_lea.vmem %s963_s13, 256  ;;  %p1203_p1 = scmp.lt.s32.totalorder %s963_s13, %s963_s13 }
 0x5d7   :  { %p1199_p0 = scmp.ne.s32.totalorder %s963_s13, %s1198_s14  ;;  %p1204_p2 = scmp.lt.s32.totalorder %s1198_s14, %s1198_s14 }
 0x5d9   :  { %p1205_p3 = por %p1204_p2, %p1203_p1 }
 0x5db   :  { %p1206_p4 = pnand %p1205_p3, %p1199_p0 }
 0x5de   :  { %v1187_v47 = vpop.eup %1186 }
 0x5df   :  { %v724_v48 = vmul.f32 %v1187_v47, %v708_v22 }
 0x5e0   :  { %v1189_v49 = vpop.eup %1188 }
 0x5e1   :  { %v730_v50 = vmul.f32 %v729_v45, %v724_v48  ;;  %v725_v51 = vmul.f32 %v1189_v49, %v709_v24  ;;  %v933_v48 = vsub.s32 2, %v1447_v42  ;;  %v939_v49 = vsub.s32 3, %v1447_v42 }
 0x5e3   :  { %v731_v53 = vmul.f32 %v729_v45, %v725_v51  ;;  %v736_v54 = vadd.f32 %v735_v52, %v730_v50  ;;  %v934_v50 = vrot.slane %v1453_v44, %v933_v48 }
 0x5e5   :  { %v737_v55 = vadd.f32 %v735_v52, %v731_v53  ;;  %v940_v52 = vrot.slane %v1453_v44, %v939_v49 }
 0x5e7   :  { %v738_v56 = vpack.c.bf16 %v737_v55, %v736_v54 }
 0x5e9   :  { %1109 = vmatmul.mubr.msk.bf16.vlgmr.msra.gmra.mrb[20].mxu1 %vm288_vm10, %v738_v56 }
 0x6bc   :  { %v792_v63 = vpop.f32.mrb[20].mxu1 }
 0x6bd   :  { %v793_v0 = vadd.f32 %v792_v63, %v742_v62  ;;  %v1110_v2 = vpop.f32.mrb[21].mxu1 }
 0x6be   :  { %v795_v3 = vpop.f32.mrb[22].mxu1 }
 0x6bf   :  { %v801_v4 = vmul.f32 0.70710677, %v793_v0  ;;  %v796_v5 = vadd.f32 %v795_v3, %v742_v62  ;;  %v1111_v6 = vpop.f32.mrb[23].mxu1  ;;  %v799_v10 = vmul.f32 0.5, %v793_v0 }
 0x6c1   :  { %1190 = verf.f32 %v801_v4  ;;  %v802_v7 = vmul.f32 0.70710677, %v796_v5  ;;  %v800_v11 = vmul.f32 0.5, %v796_v5 }
 0x6c3   :  { %1192 = verf.f32 %v802_v7 }
 0x6cb   :  { %v1191_v1 = vpop.eup %1190 }
 0x6cc   :  { %v805_v8 = vadd.f32 1.0, %v1191_v1 }
 0x6cd   :  { %v1193_v9 = vpop.eup %1192 }
 0x6ce   :  { %v806_v12 = vadd.f32 1.0, %v1193_v9  ;;  %v807_v13 = vmul.f32 %v805_v8, %v799_v10 }
 0x6d0   :  { %v808_v14 = vmul.f32 %v806_v12, %v800_v11 }
 0x6d2   :  { %v809_v15 = vpack.c.bf16 %v808_v14, %v807_v13 }
 0x6d4   :  { %1129 = vmatmul.mubr.bf16.vlgmr.msra.gmra.mrb[20].mxu0 %v809_v15 }
 0x7a7   :  { %v896_v18 = vpop.f32.mrb[20].mxu0 }
 0x7a8   :  { %v897_v19 = vadd.f32 %v896_v18, %v813_v17  ;;  %v1130_v20 = vpop.f32.mrb[21].mxu0 }
 0x7a9   :  { %v899_v21 = vpop.f32.mrb[22].mxu0 }
 0x7aa   :  { %v900_v22 = vadd.f32 %v899_v21, %v813_v17  ;;  %v1131_v23 = vpop.f32.mrb[23].mxu0  ;;  %v903_v24 = vadd.f32 %v897_v19, %v736_v54 }
 0x7ac   :  { %v905_v25 = vsel %vm288_vm10, %v903_v24, 0.0  ;;  %v904_v26 = vadd.f32 %v900_v22, %v737_v55 }
 0x7ad   :  { %906 = vadd.xlane.f32.xlu0 %v905_v25 }
 0x7ae   :  { %v908_v27 = vsel %vm288_vm10, %v904_v26, 0.0 }
 0x7af   :  { %909 = vadd.xlane.f32.xlu1 %v908_v27 }
 0x83a   :  { %v907_v28 = vpop.xlane.xlu0 %906 }
 0x83b   :  { %v911_v29 = vmul.f32 0.03125, %v907_v28 }
 0x83c   :  { %v910_v30 = vpop.xlane.xlu1 %909 }
 0x83d   :  { %v913_v31 = vsub.f32 %v903_v24, %v911_v29  ;;  %v912_v32 = vmul.f32 0.03125, %v910_v30 }
 0x83f   :  { %v914_v33 = vsub.f32 %v904_v26, %v912_v32  ;;  %v915_v34 = vmul.f32 %v913_v31, %v913_v31 }
 0x841   :  { %v917_v35 = vsel %vm288_vm10, %v915_v34, 0.0  ;;  %v916_v36 = vmul.f32 %v914_v33, %v914_v33 }
 0x842   :  { %918 = vadd.xlane.f32.xlu0 %v917_v35 }
 0x843   :  { %v920_v37 = vsel %vm288_vm10, %v916_v36, 0.0 }
 0x844   :  { %921 = vadd.xlane.f32.xlu1 %v920_v37 }
 0x855   :  { %950 = vperm.xlu1 %1142, %v33_v38  }
 0x858   :  { %945 = vperm.xlu0 %1141, %v32_v39  }
 0x8cf   :  { %v919_v40 = vpop.xlane.xlu0 %918 }
 0x8d0   :  { %v923_v41 = vmul.f32 0.03125, %v919_v40 }
 0x8d1   :  { %v922_v43 = vpop.xlane.xlu1 %921 }
 0x8d2   :  { %v925_v45 = vadd.f32 1e-05, %v923_v41  ;;  %v924_v46 = vmul.f32 0.03125, %v922_v43 }
 0x8d4   :  { %1194 = vrsqrt.f32 %v925_v45  ;;  %v926_v47 = vadd.f32 1e-05, %v924_v46 }
 0x8d5   :  { %v951_v62 = vpop.permute.xlu1 %950 }
 0x8d6   :  { %1196 = vrsqrt.f32 %v926_v47 }
 0x8d7   :  { %v946_v59 = vpop.permute.xlu0 %945 }
 0x8de   :  { %v1195_v51 = vpop.eup %1194 }
 0x8df   :  { %v929_v53 = vmul.f32 %v1195_v51, %v913_v31 }
 0x8e0   :  { %v1197_v54 = vpop.eup %1196 }
 0x8e1   :  { %v930_v55 = vmul.f32 %v1197_v54, %v914_v33  ;;  %v935_v56 = vmul.f32 %v934_v50, %v929_v53 }
 0x8e3   :  { %v936_v57 = vmul.f32 %v934_v50, %v930_v55  ;;  %v941_v58 = vadd.f32 %v940_v52, %v935_v56 }
 0x8e5   :  { %v942_v60 = vadd.f32 %v940_v52, %v936_v57  ;;  %v953_v61 = vmul.f32 %v946_v59, %v941_v58 }
 0x8e7   :  { %v954_v63 = vmul.f32 %v951_v62, %v942_v60  ;;  %955 = vst.msk [vmem:[#allocation2] sm:$0xff] %vm288_vm10, %v953_v61 }
 0x8e9   :  { %956 = vst.msk [vmem:[#allocation2 + $0x8] sm:$0xff] %vm288_vm10, %v954_v63 }
 0x8ea   :  { %1209 = shalt.err (!%p1206_p4)
}
 0x8eb   :  { %s1210_s16 = scalar_lea.hbm %s1511_s5, 256 }
 0x8ec   :  { %p1211_p5 = scmp.ne.s32.totalorder %s1511_s5, %s1210_s16  ;;  %p1214_p6 = scmp.lt.u32.totalorder %s1210_s16, %s1511_s5 }
 0x8ee   :  { %p1216_p7 = pnand %p1214_p6, %p1211_p5 }
 0x8f0   :  { %1219 = shalt.err (!%p1216_p7)
}
 0x8f1   :  { %s1228_s21 = smov 128   ;;  %s1229_s22 = smov 8  }
 0x8f2   :  { %968 = dma.vmem_to_hbm [thread:$0]  %s963_s13, 256, %s1511_s5, [#allocation3], %s1228_s21, %s1228_s21, %s1229_s22  }
 0x8f3   :  { %1220 = dma.done.wait [#allocation3], 256  }
 0x8f4   :  { %1221 = vsyncadd [#allocation3], 4294967040 }
 0x8f5   :  { %972 = vsyncpa [#allocation3], 1 }

</bundles_post_ra>
